<compile_context>
chip_gen: v7x
topology: tpu7x:2x2x1
jax: 0.10.0
libtpu: 0.0.40
codegen_flags: <defaults>
</compile_context>

<pallas_src>
import jax
import jax.numpy as jnp
from jax.experimental import pallas as pl
from jax.experimental.pallas import tpu as pltpu


def mlp_kernel(x_ref, w1_ref, b1_ref, w2_ref, b2_ref, w3_ref, b3_ref, o_ref):
    # fc1 + relu
    h1 = jnp.dot(x_ref[...], w1_ref[...], preferred_element_type=jnp.float32)
    h1 = jnp.maximum(h1 + b1_ref[...], 0.0)
    # fc2 + relu
    h2 = jnp.dot(h1, w2_ref[...], preferred_element_type=jnp.float32)
    h2 = jnp.maximum(h2 + b2_ref[...], 0.0)
    # fc3 (no activation); output block is (tm, 10) — narrow masked store is
    # cheap because the kernel is DMA-bound, not store-slot-bound.
    h3 = jnp.dot(h2, w3_ref[...], preferred_element_type=jnp.float32)
    o_ref[...] = (h3 + b3_ref[...]).astype(o_ref.dtype)


def mlp_forward(x, w1, b1, w2, b2, w3, b3, *, tm=1024):
    """y = relu(relu(x @ w1 + b1) @ w2 + b2) @ w3 + b3 via a single Pallas call.

    tm: batch tile (rows per grid step).  1024 is a good default on v5e/v6e
    (fits the 16 MiB scoped-VMEM default); on v7x prefer tm>=2048 when the
    batch gives each TensorCore several grid steps.
    """
    B, K = x.shape
    out_dim = w3.shape[1]

    # Clamp the tile to the (sublane-rounded) batch so small batches don't
    # allocate oversized double-buffered x tiles.  No jnp.pad: Pallas masks
    # the partial boundary block; rows are independent so garbage boundary
    # rows are never stored.
    tm_eff = min(tm, ((B + 7) // 8) * 8)
    grid = (pl.cdiv(B, tm_eff),)

    # Weights/biases: full-array resident blocks, same tile every grid step.
    resident = lambda a: pl.BlockSpec(a.shape, lambda i: (0,) * a.ndim)

    # Advisory cost estimate (memory-bound custom call) for XLA's scheduler.
    flops = 2 * B * (K * w1.shape[1] + w1.shape[1] * w2.shape[1]
                     + w2.shape[1] * out_dim)
    bytes_accessed = 4 * (B * K + B * out_dim
                          + w1.size + b1.size + w2.size + b2.size
                          + w3.size + b3.size)
    cost = pl.CostEstimate(flops=flops, transcendentals=0,
                           bytes_accessed=bytes_accessed)

    out = pl.pallas_call(
        mlp_kernel,
        out_shape=jax.ShapeDtypeStruct((B, out_dim), jnp.float32),
        grid=grid,
        in_specs=[
            pl.BlockSpec((tm_eff, K), lambda i: (i, 0)),  # x: batch-tiled
            resident(w1), resident(b1),
            resident(w2), resident(b2),
            resident(w3), resident(b3),
        ],
        out_specs=pl.BlockSpec((tm_eff, out_dim), lambda i: (i, 0)),
        compiler_params=pltpu.CompilerParams(
            dimension_semantics=("parallel",),   # shard batch across TCs (v7x)
            vmem_limit_bytes=32 * 1024 * 1024,   # headroom for tm up to ~2048
        ),
        cost_estimate=cost,
    )(x, w1, b1, w2, b2, w3, b3)

    return out


def init_params(key):
    # Deterministic init mimicking nn.Linear default (uniform(+-1/sqrt(fan_in))).
    dims = [(784, 16), (16, 32), (32, 10)]
    params = []
    for fin, fout in dims:
        kw, kb, key = jax.random.split(key, 3)
        bound = 1.0 / (fin ** 0.5)
        w = jax.random.uniform(kw, (fin, fout), jnp.float32, -bound, bound)
        b = jax.random.uniform(kb, (1, fout), jnp.float32, -bound, bound)
        params += [w, b]
    return params


def reference_forward(x, w1, b1, w2, b2, w3, b3):
    h = jnp.maximum(x @ w1 + b1, 0.0)
    h = jnp.maximum(h @ w2 + b2, 0.0)
    return h @ w3 + b3


if __name__ == "__main__":
    key = jax.random.PRNGKey(0)
    kx, kx2, kp = jax.random.split(key, 3)
    w1, b1, w2, b2, w3, b3 = init_params(kp)

    # Small batch: exercises the clamped-tile, single-partial-block path.
    B = 8
    x = jax.random.normal(kx, (B, 784), jnp.float32)
    out = jax.block_until_ready(mlp_forward(x, w1, b1, w2, b2, w3, b3))
    ref = reference_forward(x, w1, b1, w2, b2, w3, b3)
    assert out.shape == (B, 10)
    assert jnp.allclose(out, ref, atol=1e-4, rtol=1e-4)

    # Ragged multi-step batch: grid = cdiv(300,128) = 3 with a partial
    # boundary block — exercises the pipelined grid and boundary masking.
    B2 = 300
    x2 = jax.random.normal(kx2, (B2, 784), jnp.float32)
    out2 = jax.block_until_ready(mlp_forward(x2, w1, b1, w2, b2, w3, b3, tm=128))
    ref2 = reference_forward(x2, w1, b1, w2, b2, w3, b3)
    assert out2.shape == (B2, 10)
    assert jnp.allclose(out2, ref2, atol=1e-4, rtol=1e-4)

    print("KERNEL_OK")
</pallas_src>

<mosaic_0001>
module attributes {stable_mosaic.version = 11 : i64} {
  func.func @mlp_kernel(%arg0: i32, %arg1: memref<8x784xf32, #tpu.memory_space<vmem>>, %arg2: memref<784x16xf32, #tpu.memory_space<vmem>>, %arg3: memref<1x16xf32, #tpu.memory_space<vmem>>, %arg4: memref<16x32xf32, #tpu.memory_space<vmem>>, %arg5: memref<1x32xf32, #tpu.memory_space<vmem>>, %arg6: memref<32x10xf32, #tpu.memory_space<vmem>>, %arg7: memref<1x10xf32, #tpu.memory_space<vmem>>, %arg8: memref<8x10xf32, #tpu.memory_space<vmem>>) attributes {dimension_semantics = [#tpu.dimension_semantics<parallel>], iteration_bounds = array<i64: 1>, scalar_prefetch = 0 : i64, scratch_operands = 0 : i64, tpu.core_type = #tpu.core_type<tc>, window_params = [{transform_indices = @transform_0, window_bounds = array<i64: 8, 784>}, {pipeline_mode = #tpu.pipeline_mode<synchronous>, transform_indices = @transform_1, window_bounds = array<i64: 784, 16>}, {pipeline_mode = #tpu.pipeline_mode<synchronous>, transform_indices = @transform_2, window_bounds = array<i64: 1, 16>}, {pipeline_mode = #tpu.pipeline_mode<synchronous>, transform_indices = @transform_3, window_bounds = array<i64: 16, 32>}, {pipeline_mode = #tpu.pipeline_mode<synchronous>, transform_indices = @transform_4, window_bounds = array<i64: 1, 32>}, {pipeline_mode = #tpu.pipeline_mode<synchronous>, transform_indices = @transform_5, window_bounds = array<i64: 32, 10>}, {pipeline_mode = #tpu.pipeline_mode<synchronous>, transform_indices = @transform_6, window_bounds = array<i64: 1, 10>}, {transform_indices = @transform_7, window_bounds = array<i64: 8, 10>}]} {
    %c0 = arith.constant 0 : index
    %c0_0 = arith.constant 0 : index
    %0 = vector.load %arg1[%c0, %c0_0] : memref<8x784xf32, #tpu.memory_space<vmem>>, vector<8x784xf32>
    %c0_1 = arith.constant 0 : index
    %c0_2 = arith.constant 0 : index
    %1 = vector.load %arg2[%c0_1, %c0_2] : memref<784x16xf32, #tpu.memory_space<vmem>>, vector<784x16xf32>
    %cst = arith.constant dense<0.000000e+00> : vector<8x16xf32>
    %2 = tpu.matmul %0, %1, %cst {dimension_numbers = #tpu.dot_dimension_numbers<[1], [0], [0], [1], [0, 0, 1, 1], [], []>} : vector<8x784xf32>, vector<784x16xf32>, vector<8x16xf32> -> vector<8x16xf32>
    %c0_3 = arith.constant 0 : index
    %c0_4 = arith.constant 0 : index
    %3 = vector.load %arg3[%c0_3, %c0_4] : memref<1x16xf32, #tpu.memory_space<vmem>>, vector<1x16xf32>
    %4 = vector.broadcast %3 : vector<1x16xf32> to vector<8x16xf32>
    %5 = arith.addf %2, %4 : vector<8x16xf32>
    %cst_5 = arith.constant 0.000000e+00 : f32
    %6 = vector.broadcast %cst_5 : f32 to vector<8x16xf32>
    %7 = arith.maximumf %5, %6 : vector<8x16xf32>
    %c0_6 = arith.constant 0 : index
    %c0_7 = arith.constant 0 : index
    %8 = vector.load %arg4[%c0_6, %c0_7] : memref<16x32xf32, #tpu.memory_space<vmem>>, vector<16x32xf32>
    %cst_8 = arith.constant dense<0.000000e+00> : vector<8x32xf32>
    %9 = tpu.matmul %7, %8, %cst_8 {dimension_numbers = #tpu.dot_dimension_numbers<[1], [0], [0], [1], [0, 0, 1, 1], [], []>} : vector<8x16xf32>, vector<16x32xf32>, vector<8x32xf32> -> vector<8x32xf32>
    %c0_9 = arith.constant 0 : index
    %c0_10 = arith.constant 0 : index
    %10 = vector.load %arg5[%c0_9, %c0_10] : memref<1x32xf32, #tpu.memory_space<vmem>>, vector<1x32xf32>
    %11 = vector.broadcast %10 : vector<1x32xf32> to vector<8x32xf32>
    %12 = arith.addf %9, %11 : vector<8x32xf32>
    %cst_11 = arith.constant 0.000000e+00 : f32
    %13 = vector.broadcast %cst_11 : f32 to vector<8x32xf32>
    %14 = arith.maximumf %12, %13 : vector<8x32xf32>
    %c0_12 = arith.constant 0 : index
    %c0_13 = arith.constant 0 : index
    %15 = vector.load %arg6[%c0_12, %c0_13] : memref<32x10xf32, #tpu.memory_space<vmem>>, vector<32x10xf32>
    %cst_14 = arith.constant dense<0.000000e+00> : vector<8x10xf32>
    %16 = tpu.matmul %14, %15, %cst_14 {dimension_numbers = #tpu.dot_dimension_numbers<[1], [0], [0], [1], [0, 0, 1, 1], [], []>} : vector<8x32xf32>, vector<32x10xf32>, vector<8x10xf32> -> vector<8x10xf32>
    %c0_15 = arith.constant 0 : index
    %c0_16 = arith.constant 0 : index
    %17 = vector.load %arg7[%c0_15, %c0_16] : memref<1x10xf32, #tpu.memory_space<vmem>>, vector<1x10xf32>
    %18 = vector.broadcast %17 : vector<1x10xf32> to vector<8x10xf32>
    %19 = arith.addf %16, %18 : vector<8x10xf32>
    %c0_17 = arith.constant 0 : index
    %c0_18 = arith.constant 0 : index
    %20 = vector.load %arg8[%c0_17, %c0_18] : memref<8x10xf32, #tpu.memory_space<vmem>>, vector<8x10xf32>
    tpu.vector_store %arg8[%c0_17, %c0_18], %19 {strides = array<i32>} : memref<8x10xf32, #tpu.memory_space<vmem>>, vector<8x10xf32>,
    return
  }
  func.func @transform_0(%arg0: i32) -> (i32, i32) {
    %c0_i32 = arith.constant 0 : i32
    %c0_i32_0 = arith.constant 0 : i32
    return %arg0, %c0_i32 : i32, i32
  }
  func.func @transform_1(%arg0: i32) -> (i32, i32) {
    %c0_i32 = arith.constant 0 : i32
    %c0_i32_0 = arith.constant 0 : i32
    %c0_i32_1 = arith.constant 0 : i32
    return %c0_i32, %c0_i32_0 : i32, i32
  }
  func.func @transform_2(%arg0: i32) -> (i32, i32) {
    %c0_i32 = arith.constant 0 : i32
    %c0_i32_0 = arith.constant 0 : i32
    %c0_i32_1 = arith.constant 0 : i32
    return %c0_i32, %c0_i32_0 : i32, i32
  }
  func.func @transform_3(%arg0: i32) -> (i32, i32) {
    %c0_i32 = arith.constant 0 : i32
    %c0_i32_0 = arith.constant 0 : i32
    %c0_i32_1 = arith.constant 0 : i32
    return %c0_i32, %c0_i32_0 : i32, i32
  }
  func.func @transform_4(%arg0: i32) -> (i32, i32) {
    %c0_i32 = arith.constant 0 : i32
    %c0_i32_0 = arith.constant 0 : i32
    %c0_i32_1 = arith.constant 0 : i32
    return %c0_i32, %c0_i32_0 : i32, i32
  }
  func.func @transform_5(%arg0: i32) -> (i32, i32) {
    %c0_i32 = arith.constant 0 : i32
    %c0_i32_0 = arith.constant 0 : i32
    %c0_i32_1 = arith.constant 0 : i32
    return %c0_i32, %c0_i32_0 : i32, i32
  }
  func.func @transform_6(%arg0: i32) -> (i32, i32) {
    %c0_i32 = arith.constant 0 : i32
    %c0_i32_0 = arith.constant 0 : i32
    %c0_i32_1 = arith.constant 0 : i32
    return %c0_i32, %c0_i32_0 : i32, i32
  }
  func.func @transform_7(%arg0: i32) -> (i32, i32) {
    %c0_i32 = arith.constant 0 : i32
    %c0_i32_0 = arith.constant 0 : i32
    return %arg0, %c0_i32 : i32, i32
  }
}

</mosaic_0001>

<bundles_post_ra>
// kernel: tpu_custom_call.1
= control target key start
LH: loop header
LB: loop body
LE: loop exit
PB: predicated region body
PF: predicated region fallthrough
CT: control target
= control target key end

     0   :  { %s1301_s0 = inlined_call_operand.vmem [shape: f32[8,784], index: 0, kind: input, shape index: {}]   ;;  %s1302_s1 = inlined_call_operand.vmem [shape: f32[784,16], index: 1, kind: input, shape index: {}]   ;;  %s1303_s2 = inlined_call_operand.vmem [shape: f32[1,16], index: 2, kind: input, shape index: {}]   ;;  %s1304_s3 = inlined_call_operand.vmem [shape: f32[16,32], index: 3, kind: input, shape index: {}]   ;;  %s1305_s4 = inlined_call_operand.vmem [shape: f32[1,32], index: 4, kind: input, shape index: {}]   ;;  %s1306_s5 = inlined_call_operand.vmem [shape: f32[32,10], index: 5, kind: input, shape index: {}]   ;;  %s1307_s6 = inlined_call_operand.vmem [shape: f32[1,10], index: 6, kind: input, shape index: {}]   ;;  %s1308_s7 = inlined_call_operand.hbm [shape: f32[8,10], index: 7, kind: output, shape index: {}]  }
   0x1   :  { %v50_v0 = vld [vmem:[%s1302_s1 + $0x80] sm:$0xff]  ;;  %v51_v1 = vld [vmem:[%s1302_s1 + $0x88] sm:$0xff]  ;;  %v52_v11 = vld [vmem:[%s1302_s1 + $0x90] sm:$0xff] }
   0x2   :  { %v34_v2 = vld [vmem:[%s1302_s1] sm:$0xff]  ;;  %v755_v3 = vpack.c.bf16 %v51_v1, %v50_v0  ;;  %v35_v4 = vld [vmem:[%s1302_s1 + $0x8] sm:$0xff]  ;;  %v53_v13 = vld [vmem:[%s1302_s1 + $0x98] sm:$0xff] }
   0x3   :  { %v82_v5 = vld [vmem:[%s1302_s1 + $0x180] sm:$0xff]  ;;  %v83_v6 = vld [vmem:[%s1302_s1 + $0x188] sm:$0xff]  ;;  %v757_v7 = vpack.c.bf16 %v35_v4, %v34_v2  ;;  %v36_v14 = vld [vmem:[%s1302_s1 + $0x10] sm:$0xff]  ;;  %v759_v16 = vpack.c.bf16 %v53_v13, %v52_v11 }
   0x4   :  { %v787_v8 = vpack.c.bf16 %v83_v6, %v82_v5  ;;  %v66_v9 = vld [vmem:[%s1302_s1 + $0x100] sm:$0xff]  ;;  %v67_v10 = vld [vmem:[%s1302_s1 + $0x108] sm:$0xff]  ;;  %756 = vmatprep.subr.bf16.mxu0 %v755_v3  ;;  %v37_v15 = vld [vmem:[%s1302_s1 + $0x18] sm:$0xff] }
   0x5   :  { %v789_v12 = vpack.c.bf16 %v67_v10, %v66_v9  ;;  %758 = vmatpush3.bf16.msra.mxu0 %v757_v7  ;;  %v761_v17 = vpack.c.bf16 %v37_v15, %v36_v14  ;;  %v84_v18 = vld [vmem:[%s1302_s1 + $0x190] sm:$0xff]  ;;  %v85_v19 = vld [vmem:[%s1302_s1 + $0x198] sm:$0xff]  ;;  %v54_v23 = vld [vmem:[%s1302_s1 + $0xa0] sm:$0xff] }
   0x6   :  { %788 = vmatprep.subr.bf16.mxu1 %v787_v8  ;;  %v68_v20 = vld [vmem:[%s1302_s1 + $0x110] sm:$0xff]  ;;  %v791_v21 = vpack.c.bf16 %v85_v19, %v84_v18  ;;  %v69_v22 = vld [vmem:[%s1302_s1 + $0x118] sm:$0xff]  ;;  %v55_v24 = vld [vmem:[%s1302_s1 + $0xa8] sm:$0xff]  ;;  %760 = vmatprep.subr.bf16.mxu0 %v759_v16 }
   0x7   :  { %790 = vmatpush3.bf16.msra.mxu1 %v789_v12  ;;  %v793_v25 = vpack.c.bf16 %v69_v22, %v68_v20  ;;  %v763_v26 = vpack.c.bf16 %v55_v24, %v54_v23  ;;  %v38_v27 = vld [vmem:[%s1302_s1 + $0x20] sm:$0xff]  ;;  %v39_v28 = vld [vmem:[%s1302_s1 + $0x28] sm:$0xff]  ;;  %v56_v35 = vld [vmem:[%s1302_s1 + $0xb0] sm:$0xff] }
   0x8   :  { %v86_v29 = vld [vmem:[%s1302_s1 + $0x1a0] sm:$0xff]  ;;  %792 = vmatprep.subr.bf16.mxu1 %v791_v21  ;;  %v87_v30 = vld [vmem:[%s1302_s1 + $0x1a8] sm:$0xff]  ;;  %v765_v33 = vpack.c.bf16 %v39_v28, %v38_v27  ;;  %v57_v36 = vld [vmem:[%s1302_s1 + $0xb8] sm:$0xff] }
   0x9   :  { %v70_v31 = vld [vmem:[%s1302_s1 + $0x120] sm:$0xff]  ;;  %v71_v32 = vld [vmem:[%s1302_s1 + $0x128] sm:$0xff]  ;;  %762 = vmatpush3.bf16.msra.mxu0 %v761_v17  ;;  %v795_v34 = vpack.c.bf16 %v87_v30, %v86_v29  ;;  %v40_v37 = vld [vmem:[%s1302_s1 + $0x30] sm:$0xff]  ;;  %v767_v39 = vpack.c.bf16 %v57_v36, %v56_v35 }
   0xa   :  { %764 = vmatprep.subr.bf16.mxu0 %v763_v26  ;;  %v797_v38 = vpack.c.bf16 %v71_v32, %v70_v31  ;;  %v41_v40 = vld [vmem:[%s1302_s1 + $0x38] sm:$0xff]  ;;  %v88_v41 = vld [vmem:[%s1302_s1 + $0x1b0] sm:$0xff]  ;;  %v58_v46 = vld [vmem:[%s1302_s1 + $0xc0] sm:$0xff] }
   0xb   :  { %794 = vmatpush3.bf16.msra.mxu1 %v793_v25  ;;  %v89_v42 = vld [vmem:[%s1302_s1 + $0x1b8] sm:$0xff]  ;;  %v72_v44 = vld [vmem:[%s1302_s1 + $0x130] sm:$0xff]  ;;  %v59_v47 = vld [vmem:[%s1302_s1 + $0xc8] sm:$0xff]  ;;  %v769_v48 = vpack.c.bf16 %v41_v40, %v40_v37 }
   0xc   :  { %796 = vmatprep.subr.bf16.mxu1 %v795_v34  ;;  %v799_v43 = vpack.c.bf16 %v89_v42, %v88_v41  ;;  %v73_v45 = vld [vmem:[%s1302_s1 + $0x138] sm:$0xff]  ;;  %v90_v49 = vld [vmem:[%s1302_s1 + $0x1c0] sm:$0xff]  ;;  %v91_v50 = vld [vmem:[%s1302_s1 + $0x1c8] sm:$0xff]  ;;  %v771_v52 = vpack.c.bf16 %v59_v47, %v58_v46 }
   0xd   :  { %766 = vmatpush3.bf16.msra.mxu0 %v765_v33  ;;  %v801_v51 = vpack.c.bf16 %v73_v45, %v72_v44  ;;  %v42_v53 = vld [vmem:[%s1302_s1 + $0x40] sm:$0xff]  ;;  %v43_v54 = vld [vmem:[%s1302_s1 + $0x48] sm:$0xff]  ;;  %v803_v56 = vpack.c.bf16 %v91_v50, %v90_v49  ;;  %v60_v58 = vld [vmem:[%s1302_s1 + $0xd0] sm:$0xff]  ;;  %v891_v50 = vmov 0.0|0.0  }
   0xe   :  { %768 = vmatprep.subr.bf16.mxu0 %v767_v39  ;;  %v74_v55 = vld [vmem:[%s1302_s1 + $0x140] sm:$0xff]  ;;  %v75_v57 = vld [vmem:[%s1302_s1 + $0x148] sm:$0xff]  ;;  %v61_v59 = vld [vmem:[%s1302_s1 + $0xd8] sm:$0xff]  ;;  %v773_v62 = vpack.c.bf16 %v43_v54, %v42_v53 }
   0xf   :  { %798 = vmatpush3.bf16.msra.mxu1 %v797_v38  ;;  %v92_v60 = vld [vmem:[%s1302_s1 + $0x1d0] sm:$0xff]  ;;  %v93_v61 = vld [vmem:[%s1302_s1 + $0x1d8] sm:$0xff]  ;;  %v805_v63 = vpack.c.bf16 %v75_v57, %v74_v55  ;;  %v775_v0 = vpack.c.bf16 %v61_v59, %v60_v58  ;;  %v62_v6 = vld [vmem:[%s1302_s1 + $0xe0] sm:$0xff] }
  0x10   :  { %800 = vmatprep.subr.bf16.mxu1 %v799_v43  ;;  %v44_v1 = vld [vmem:[%s1302_s1 + $0x50] sm:$0xff]  ;;  %v45_v2 = vld [vmem:[%s1302_s1 + $0x58] sm:$0xff]  ;;  %v807_v4 = vpack.c.bf16 %v93_v61, %v92_v60  ;;  %v63_v7 = vld [vmem:[%s1302_s1 + $0xe8] sm:$0xff] }
  0x11   :  { %770 = vmatpush3.bf16.msra.mxu0 %v769_v48  ;;  %v76_v3 = vld [vmem:[%s1302_s1 + $0x150] sm:$0xff]  ;;  %v77_v5 = vld [vmem:[%s1302_s1 + $0x158] sm:$0xff]  ;;  %v94_v8 = vld [vmem:[%s1302_s1 + $0x1e0] sm:$0xff]  ;;  %v777_v10 = vpack.c.bf16 %v45_v2, %v44_v1  ;;  %v779_v14 = vpack.c.bf16 %v63_v7, %v62_v6 }
  0x12   :  { %772 = vmatprep.subr.bf16.mxu0 %v771_v52  ;;  %v95_v9 = vld [vmem:[%s1302_s1 + $0x1e8] sm:$0xff]  ;;  %v46_v11 = vld [vmem:[%s1302_s1 + $0x60] sm:$0xff]  ;;  %v809_v13 = vpack.c.bf16 %v77_v5, %v76_v3  ;;  %v64_v19 = vld [vmem:[%s1302_s1 + $0xf0] sm:$0xff] }
  0x13   :  { %802 = vmatpush3.bf16.msra.mxu1 %v801_v51  ;;  %v28_v12 = vld [vmem:[%s1301_s0 + $0x8] sm:$0xff]  ;;  %v78_v16 = vld [vmem:[%s1302_s1 + $0x160] sm:$0xff]  ;;  %v811_v18 = vpack.c.bf16 %v95_v9, %v94_v8  ;;  %v65_v20 = vld [vmem:[%s1302_s1 + $0xf8] sm:$0xff] }
  0x14   :  { %804 = vmatprep.subr.bf16.mxu1 %v803_v56  ;;  %v47_v15 = vld [vmem:[%s1302_s1 + $0x68] sm:$0xff]  ;;  %207 = vmatprep.mubr.f32.mxu0 %v28_v12  ;;  %v30_v21 = vld [vmem:[%s1301_s0 + $0x18] sm:$0xff]  ;;  %v96_v22 = vld [vmem:[%s1302_s1 + $0x1f0] sm:$0xff]  ;;  %v783_v26 = vpack.c.bf16 %v65_v20, %v64_v19 }
  0x15   :  { %774 = vmatpush3.bf16.msra.mxu0 %v773_v62  ;;  %v79_v17 = vld [vmem:[%s1302_s1 + $0x168] sm:$0xff]  ;;  %v97_v23 = vld [vmem:[%s1302_s1 + $0x1f8] sm:$0xff]  ;;  %277 = vmatprep.mubr.f32.mxu1 %v30_v21  ;;  %v781_v24 = vpack.c.bf16 %v47_v15, %v46_v11  ;;  %v48_v27 = vld [vmem:[%s1302_s1 + $0x70] sm:$0xff] }
  0x16   :  { %776 = vmatprep.subr.bf16.mxu0 %v775_v0  ;;  %v813_v25 = vpack.c.bf16 %v79_v17, %v78_v16  ;;  %v49_v28 = vld [vmem:[%s1302_s1 + $0x78] sm:$0xff]  ;;  %v80_v29 = vld [vmem:[%s1302_s1 + $0x170] sm:$0xff]  ;;  %v815_v30 = vpack.c.bf16 %v97_v23, %v96_v22  ;;  %v114_v32 = vld [vmem:[%s1302_s1 + $0x280] sm:$0xff] }
  0x17   :  { %806 = vmatpush3.bf16.msra.mxu1 %v805_v63  ;;  %v81_v31 = vld [vmem:[%s1302_s1 + $0x178] sm:$0xff]  ;;  %v115_v33 = vld [vmem:[%s1302_s1 + $0x288] sm:$0xff]  ;;  %v785_v34 = vpack.c.bf16 %v49_v28, %v48_v27  ;;  %v98_v37 = vld [vmem:[%s1302_s1 + $0x200] sm:$0xff] }
  0x18   :  { %808 = vmatprep.subr.bf16.mxu1 %v807_v4  ;;  %v817_v35 = vpack.c.bf16 %v81_v31, %v80_v29  ;;  %v819_v36 = vpack.c.bf16 %v115_v33, %v114_v32  ;;  %v99_v38 = vld [vmem:[%s1302_s1 + $0x208] sm:$0xff]  ;;  %v116_v39 = vld [vmem:[%s1302_s1 + $0x290] sm:$0xff]  ;;  %v117_v40 = vld [vmem:[%s1302_s1 + $0x298] sm:$0xff] }
  0x19   :  { %778 = vmatpush3.bf16.msra.mxu0 %v777_v10  ;;  %v27_v41 = vld [vmem:[%s1301_s0] sm:$0xff]  ;;  %v821_v42 = vpack.c.bf16 %v99_v38, %v98_v37  ;;  %v29_v43 = vld [vmem:[%s1301_s0 + $0x10] sm:$0xff]  ;;  %v823_v45 = vpack.c.bf16 %v117_v40, %v116_v39  ;;  %v101_v46 = vld [vmem:[%s1302_s1 + $0x218] sm:$0xff] }
  0x1a   :  { %780 = vmatprep.subr.bf16.mxu0 %v779_v14  ;;  %v100_v44 = vld [vmem:[%s1302_s1 + $0x210] sm:$0xff]  ;;  %v118_v47 = vld [vmem:[%s1302_s1 + $0x2a0] sm:$0xff]  ;;  %v119_v48 = vld [vmem:[%s1302_s1 + $0x2a8] sm:$0xff] }
  0x1b   :  { %810 = vmatpush3.bf16.msra.mxu1 %v809_v13  ;;  %v32_v49 = vld [vmem:[%s1301_s0 + $0x28] sm:$0xff]  ;;  %v130_v51 = vld [vmem:[%s1302_s1 + $0x300] sm:$0xff] }
  0x1c   :  { %812 = vmatprep.subr.bf16.mxu1 %v811_v18  ;;  %v131_v52 = vld [vmem:[%s1302_s1 + $0x308] sm:$0xff] }
  0x1d   :  { %782 = vmatpush3.bf16.msra.mxu0 %v781_v24  ;;  %v852_v53 = vpack.c.bf16 %v131_v52, %v130_v51 }
  0x1e   :  { %784 = vmatprep.subr.bf16.mxu0 %v783_v26 }
  0x1f   :  { %814 = vmatpush3.bf16.msra.mxu1 %v813_v25 }
  0x20   :  { %816 = vmatprep.subr.bf16.mxu1 %v815_v30 }
  0x21   :  { %786 = vmatpush3.bf16.msra.mxu0 %v785_v34 }
  0x22   :  { %820 = vmatprep.subr.bf16.mxu0 %v819_v36 }
  0x23   :  { %818 = vmatpush3.bf16.msra.mxu1 %v817_v35 }
  0x24   :  { %851 = vmatprep.subr.bf16.mxu1 %v891_v50  ;;  %208 = vmatmul.mubr.f32.vlgmr.msra.gmra.mrb[0].mxu0 %v27_v41 }
  0x25   :  { %12 = vsyncpa [#allocation3], 0  ;;  %822 = vmatpush3.bf16.msra.mxu0 %v821_v42  ;;  %v825_v54 = vpack.c.bf16 %v101_v46, %v100_v44  ;;  %v827_v55 = vpack.c.bf16 %v119_v48, %v118_v47  ;;  %v102_v56 = vld [vmem:[%s1302_s1 + $0x220] sm:$0xff]  ;;  %v103_v57 = vld [vmem:[%s1302_s1 + $0x228] sm:$0xff]  ;;  %347 = vmatprep.mubr.f32.mxu0 %v32_v49  ;;  %vm892_vm0 = vmmov 0   ;;  %v893_v60 = vmov 0.0  }
  0x26   :  { %278 = vmatmul.mubr.f32.vlgmr.msra.gmra.mrb[0].mxu1 %v29_v43  ;;  %824 = vmatprep.subr.bf16.mxu0 %v823_v45  ;;  %v120_v58 = vld [vmem:[%s1302_s1 + $0x2b0] sm:$0xff]  ;;  %v121_v59 = vld [vmem:[%s1302_s1 + $0x2b8] sm:$0xff]  ;;  %vm139_vm1 = vcmask 130048   ;;  %v829_v62 = vpack.c.bf16 %v103_v57, %v102_v56  ;;  %v122_v2 = vld [vmem:[%s1302_s1 + $0x2c0] sm:$0xff]  ;;  %vm518_vm2 = vcmask 261120   ;;  %s894_s18 = smov [#allocation2]  }
  0x27   :  { %853 = vmatpush3.bf16.msra.mxu1 %v852_v53  ;;  %734 = vmatprep.mubr.msk.f32.mxu1 %vm892_vm0, %v893_v60  ;;  %v33_v61 = vld [vmem:[%s1301_s0 + $0x30] sm:$0xff]  ;;  %v831_v63 = vpack.c.bf16 %v121_v59, %v120_v58  ;;  %v105_v1 = vld [vmem:[%s1302_s1 + $0x238] sm:$0xff]  ;;  %v123_v3 = vld [vmem:[%s1302_s1 + $0x2c8] sm:$0xff]  ;;  %s600_s19 = sshll.u32 %s894_s18, 4  ;;  %vm592_vm3 = vcmask 80896   ;;  %s601_s19 = int_to_ptr.vmem [resolvable:$true] %s600_s19 }
  0x28   :  { %854 = vmatprep.subr.bf16.mxu1 %v891_v50  ;;  %v104_v0 = vld [vmem:[%s1302_s1 + $0x230] sm:$0xff]  ;;  %v835_v5 = vpack.c.bf16 %v123_v3, %v122_v2  ;;  %v106_v6 = vld [vmem:[%s1302_s1 + $0x240] sm:$0xff]  ;;  %v107_v7 = vld [vmem:[%s1302_s1 + $0x248] sm:$0xff]  ;;  %p872_p1 = scmp.lt.s32.totalorder %s601_s19, %s601_s19 }
  0x29   :  { %826 = vmatpush3.bf16.msra.mxu0 %v825_v54  ;;  %v833_v4 = vpack.c.bf16 %v105_v1, %v104_v0  ;;  %v124_v8 = vld [vmem:[%s1302_s1 + $0x2d0] sm:$0xff]  ;;  %v125_v9 = vld [vmem:[%s1302_s1 + $0x2d8] sm:$0xff]  ;;  %v837_v10 = vpack.c.bf16 %v107_v7, %v106_v6  ;;  %v126_v14 = vld [vmem:[%s1302_s1 + $0x2e0] sm:$0xff] }
  0x2a   :  { %828 = vmatprep.subr.bf16.mxu0 %v827_v55  ;;  %735 = vmatmul.mubr.msk.f32.vlgmr.msra.gmra.mrb[2].mxu1 %vm139_vm1, %v33_v61  ;;  %v839_v11 = vpack.c.bf16 %v125_v9, %v124_v8  ;;  %v108_v12 = vld [vmem:[%s1302_s1 + $0x250] sm:$0xff]  ;;  %v109_v13 = vld [vmem:[%s1302_s1 + $0x258] sm:$0xff]  ;;  %v127_v15 = vld [vmem:[%s1302_s1 + $0x2e8] sm:$0xff] }
  0x2b   :  { %741 = vmatprep.mubr.msk.f32.mxu1 %vm892_vm0, %v893_v60  ;;  %v841_v16 = vpack.c.bf16 %v109_v13, %v108_v12  ;;  %v843_v17 = vpack.c.bf16 %v127_v15, %v126_v14  ;;  %v110_v18 = vld [vmem:[%s1302_s1 + $0x260] sm:$0xff]  ;;  %v111_v19 = vld [vmem:[%s1302_s1 + $0x268] sm:$0xff]  ;;  %v128_v20 = vld [vmem:[%s1302_s1 + $0x2f0] sm:$0xff] }
  0x2c   :  { %v129_v21 = vld [vmem:[%s1302_s1 + $0x2f8] sm:$0xff]  ;;  %v845_v22 = vpack.c.bf16 %v111_v19, %v110_v18  ;;  %v112_v24 = vld [vmem:[%s1302_s1 + $0x270] sm:$0xff]  ;;  %v31_v27 = vld [vmem:[%s1301_s0 + $0x20] sm:$0xff] }
  0x2d   :  { %830 = vmatpush3.bf16.msra.mxu0 %v829_v62  ;;  %v847_v23 = vpack.c.bf16 %v129_v21, %v128_v20  ;;  %v113_v25 = vld [vmem:[%s1302_s1 + $0x278] sm:$0xff]  ;;  %v424_v28 = vld [vmem:[%s1304_s3] sm:$0xff]  ;;  %v425_v29 = vld [vmem:[%s1304_s3 + $0x8] sm:$0xff] }
  0x2e   :  { %832 = vmatprep.subr.bf16.mxu0 %v831_v63  ;;  %v849_v26 = vpack.c.bf16 %v113_v25, %v112_v24  ;;  %v855_v30 = vpack.c.bf16 %v425_v29, %v424_v28  ;;  %v608_v32 = vld [vmem:[%s1303_s2] ss:$0 sm:$0xff]  ;;  %v508_v47 = vld [vmem:[%s1306_s5 + $0x8] sm:$0xff]  ;;  %v509_v52 = vld [vmem:[%s1306_s5 + $0x10] sm:$0xff] }
  0x2f   :  { %v507_v46 = vld [vmem:[%s1306_s5] sm:$0xff]  ;;  %v510_v53 = vld [vmem:[%s1306_s5 + $0x18] sm:$0xff]  ;;  %s867_s5 = scalar_lea.vmem %s601_s19, 128 }
  0x30   :  { %856 = vmatpush3.bf16.msra.mxu1 %v855_v30  ;;  %v858_v49 = vpack.c.bf16 %v508_v47, %v507_v46  ;;  %v861_v54 = vpack.c.bf16 %v510_v53, %v509_v52  ;;  %v610_v55 = vld [vmem:[%s1305_s4] ss:$0 sm:$0xff]  ;;  %p868_p0 = scmp.ne.s32.totalorder %s601_s19, %s867_s5  ;;  %p873_p2 = scmp.lt.s32.totalorder %s867_s5, %s867_s5 }
  0x31   :  { %834 = vmatpush3.bf16.msra.mxu0 %v833_v4  ;;  %857 = vmatprep.subr.bf16.mxu1 %v891_v50 }
  0x32   :  { %836 = vmatprep.subr.bf16.mxu0 %v835_v5  ;;  %p874_p3 = por %p873_p2, %p872_p1 }
  0x34   :  { %p875_p4 = pnand %p874_p3, %p868_p0 }
  0x35   :  { %838 = vmatpush3.bf16.msra.mxu0 %v837_v10 }
  0x36   :  { %840 = vmatprep.subr.bf16.mxu0 %v839_v11 }
  0x39   :  { %842 = vmatpush3.bf16.msra.mxu0 %v841_v16 }
  0x3a   :  { %844 = vmatprep.subr.bf16.mxu0 %v843_v17 }
  0x3d   :  { %846 = vmatpush3.bf16.msra.mxu0 %v845_v22 }
  0x3e   :  { %848 = vmatprep.subr.bf16.mxu0 %v847_v23 }
  0x41   :  { %850 = vmatpush3.bf16.msra.mxu0 %v849_v26 }
  0x44   :  { %348 = vmatmul.mubr.f32.vlgmr.msra.gmra.mrb[2].mxu0 %v31_v27 }
  0xf7   :  { %v646_v31 = vpop.f32.mrb[0].mxu0 }
  0xf8   :  { %v647_v33 = vpop.f32.mrb[1].mxu0 }
  0xf9   :  { %v681_v34 = vpop.f32.mrb[0].mxu1  ;;  %v648_v35 = vadd.f32 %v647_v33, %v646_v31 }
  0xfa   :  { %v682_v36 = vpop.f32.mrb[1].mxu1 }
  0xfb   :  { %v683_v37 = vadd.f32 %v682_v36, %v681_v34  ;;  %v210_v38 = vadd.f32 %v648_v35, %v608_v32 }
  0xfd   :  { %v280_v39 = vadd.f32 %v683_v37, %v210_v38  ;;  %v419_v40 = vpop.f32.mrb[2].mxu1 }
  0xfe   :  { %v736_v41 = vpop.f32.mrb[3].mxu1 }
 0x117   :  { %v716_v42 = vpop.f32.mrb[2].mxu0 }
 0x118   :  { %v717_v43 = vpop.f32.mrb[3].mxu0 }
 0x119   :  { %v718_v44 = vadd.f32 %v717_v43, %v716_v42 }
 0x11b   :  { %v350_v45 = vadd.f32 %v718_v44, %v280_v39 }
 0x11d   :  { %v420_v48 = vadd.f32 %v419_v40, %v350_v45 }
 0x11f   :  { %v423_v51 = vmax.f32 %v420_v48, 0.0 }
 0x121   :  { %742 = vmatmul.mubr.msk.f32.vlgmr.msra.gmra.mrb[4].mxu1 %vm139_vm1, %v423_v51 }
 0x122   :  { %859 = vmatpush3.bf16.msra.mxu1 %v858_v49  ;;  %752 = vmatprep.mubr.msk.f32.mxu1 %vm892_vm0, %v893_v60 }
 0x123   :  { %860 = vmatprep.subr.bf16.mxu1 %v891_v50  ;;  %v612_v50 = vld [vmem:[%s1307_s6] ss:$0 sm:$0xff] }
 0x126   :  { %862 = vmatpush3.bf16.msra.mxu1 %v861_v54 }
 0x1f4   :  { %v502_v56 = vpop.f32.mrb[4].mxu1 }
 0x1f5   :  { %v503_v57 = vadd.f32 %v610_v55, %v502_v56  ;;  %v743_v58 = vpop.f32.mrb[5].mxu1 }
 0x1f7   :  { %v506_v59 = vmax.f32 %v503_v57, 0.0 }
 0x1f9   :  { %753 = vmatmul.mubr.msk.f32.vlgmr.msra.gmra.mrb[6].mxu1 %vm518_vm2, %v506_v59 }
 0x2cc   :  { %v588_v60 = vpop.f32.mrb[6].mxu1 }
 0x2cd   :  { %v589_v61 = vadd.f32 %v612_v50, %v588_v60  ;;  %v754_v62 = vpop.f32.mrb[7].mxu1 }
 0x2cf   :  { %593 = vst.msk [vmem:[#allocation2] sm:$0xff] %vm592_vm3, %v589_v61 }
 0x2d0   :  { %878 = shalt.err (!%p875_p4)
}
 0x2d1   :  { %s879_s21 = scalar_lea.hbm %s1308_s7, 128 }
 0x2d2   :  { %p880_p5 = scmp.ne.s32.totalorder %s1308_s7, %s879_s21  ;;  %p883_p6 = scmp.lt.u32.totalorder %s879_s21, %s1308_s7 }
 0x2d4   :  { %p885_p7 = pnand %p883_p6, %p880_p5 }
 0x2d6   :  { %888 = shalt.err (!%p885_p7)
}
 0x2d7   :  { %603 = dma.vmem_to_hbm [thread:$0]  %s601_s19, 128, %s1308_s7, [#allocation3]  }
 0x2d8   :  { %889 = dma.done.wait [#allocation3], 128  }
 0x2d9   :  { %890 = vsyncadd [#allocation3], 4294967168 }
 0x2da   :  { %607 = vsyncpa [#allocation3], 1 }

</bundles_post_ra>
